<compile_context>
chip_gen: v6e
topology: v6e:2x2x1
jax: 0.10.0
libtpu: 0.0.40
codegen_flags: <defaults>
</compile_context>

<pallas_src>
import functools

import jax
import jax.numpy as jnp
from jax.experimental import pallas as pl
from jax.experimental.pallas import tpu as pltpu


# ----------------------------------------------------------------------------
# Kernels
# ----------------------------------------------------------------------------
def _log_softmax_kernel(x_ref, o_ref):
    """Whole rows resident in VMEM: stable log-softmax along the last axis."""
    x = x_ref[...]
    # Max is exact in the input dtype (f32/bf16); only the shifted values are
    # upcast to f32, saving one full-tile f32 copy of the raw input.
    m = jnp.max(x, axis=-1, keepdims=True).astype(jnp.float32)
    shifted = x.astype(jnp.float32) - m
    lse = jnp.log(jnp.sum(jnp.exp(shifted), axis=-1, keepdims=True))
    o_ref[...] = (shifted - lse).astype(o_ref.dtype)


def _log_softmax_wide_kernel(x_ref, o_ref, m_ref, l_ref, *, D, td):
    """Two-pass online-logsumexp variant for rows too wide for one VMEM tile.

    grid = (batch_tiles, 2, d_tiles):
      pass p==0 accumulates the running row max / rescaled exp-sum into VMEM
      scratch; pass p==1 re-reads x and writes x - m - log(l).
    Per-row math only, so padded rows (partial batch tile) never contaminate
    valid rows; padded columns of the last D tile are masked to -inf.
    """
    p = pl.program_id(1)
    j = pl.program_id(2)

    @pl.when(jnp.logical_and(p == 0, j == 0))
    def _():
        m_ref[...] = jnp.full_like(m_ref, -jnp.inf)
        l_ref[...] = jnp.zeros_like(l_ref)

    @pl.when(p == 0)
    def _():
        col = jax.lax.broadcasted_iota(jnp.int32, x_ref.shape, 1) + j * td
        x = jnp.where(col < D, x_ref[...].astype(jnp.float32), -jnp.inf)
        m_old = m_ref[...]
        m_new = jnp.maximum(m_old, jnp.max(x, axis=-1, keepdims=True))
        l_ref[...] = (l_ref[...] * jnp.exp(m_old - m_new)
                      + jnp.sum(jnp.exp(x - m_new), axis=-1, keepdims=True))
        m_ref[...] = m_new

    @pl.when(p == 1)
    def _():
        x = x_ref[...].astype(jnp.float32)
        o_ref[...] = (x - m_ref[...] - jnp.log(l_ref[...])).astype(o_ref.dtype)


# ----------------------------------------------------------------------------
# Tiling heuristics
# ----------------------------------------------------------------------------
def _vmem_capacity_bytes() -> int:
    """Physical VMEM per TensorCore; conservative fallback if query fails."""
    try:
        return int(pltpu.get_tpu_info().vmem_capacity_bytes)
    except Exception:
        return 64 << 20  # assume the smallest (v7x-sized) VMEM


def _pick_batch_tile(B, D, itemsize, tile_budget, sub, per_row):
    """Row-tile size for the whole-row path (per_row * sub <= tile_budget)."""
    tb_budget = (tile_budget // max(per_row, 1)) // sub * sub
    b_pad = pl.cdiv(B, sub) * sub
    prob_bytes = B * D * itemsize
    # Tiny problems: one grid step — per-step (~0.35 us) overhead and an
    # unfillable 2-step pipeline cost more than they save.
    if tb_budget >= b_pad and prob_bytes <= (2 << 20):
        return b_pad
    # Otherwise aim for >= 4 steps (2 buffers x 2 TensorCores on v7x) so the
    # double-buffered DMA pipeline fills; cap tiles at 2048 rows (mem-bound,
    # diminishing returns past ~512-2048).
    tb_steps = pl.cdiv(pl.cdiv(B, 4), sub) * sub
    tb = min(tb_budget, 2048, max(tb_steps, sub))
    return max(tb, sub)


# ----------------------------------------------------------------------------
# Public entry point
# ----------------------------------------------------------------------------
def log_softmax(x: jax.Array, *, max_tile_bytes: int | None = None) -> jax.Array:
    """log_softmax over the last axis of a 2D (batch, dim) array."""
    assert x.ndim == 2, "expected (batch, dim) input"
    B, D = x.shape
    itemsize = x.dtype.itemsize
    sub = max(8, 32 // itemsize)  # packed sublane height: 8 f32, 16 bf16, 32 i8

    cap = _vmem_capacity_bytes()
    vmem_limit = (cap * 3) // 4              # 96 MiB on v5e/v6e, 48 MiB on v7x
    tile_budget = (vmem_limit * 4) // 5      # headroom for compiler scratch
    if max_tile_bytes is not None:           # test hook to force the wide path
        tile_budget = min(tile_budget, max_tile_bytes)

    # Per-row VMEM model: in + out, each double-buffered (4*itemsize) plus
    # ~2 f32 intermediates (8 bytes) per element.
    per_row = D * (4 * itemsize + 8)

    if per_row * sub <= tile_budget:
        # -------- whole-row path --------
        tb = _pick_batch_tile(B, D, itemsize, tile_budget, sub, per_row)
        grid = (pl.cdiv(B, tb),)
        return pl.pallas_call(
            _log_softmax_kernel,
            out_shape=jax.ShapeDtypeStruct((B, D), x.dtype),
            grid=grid,
            in_specs=[pl.BlockSpec((tb, D), lambda i: (i, 0))],
            out_specs=pl.BlockSpec((tb, D), lambda i: (i, 0)),
            compiler_params=pltpu.CompilerParams(
                dimension_semantics=("parallel",),
                vmem_limit_bytes=int(vmem_limit)),
            cost_estimate=pl.CostEstimate(
                flops=5 * B * D,
                transcendentals=B * D,
                bytes_accessed=2 * B * D * itemsize),
        )(x)

    # -------- wide-D path: split the feature axis, two passes --------
    tb = sub
    per_col = tb * (4 * itemsize + 8)
    td = max(128, (tile_budget // max(per_col, 1)) // 128 * 128)
    grid = (pl.cdiv(B, tb), 2, pl.cdiv(D, td))
    kernel = functools.partial(_log_softmax_wide_kernel, D=D, td=td)
    return pl.pallas_call(
        kernel,
        out_shape=jax.ShapeDtypeStruct((B, D), x.dtype),
        grid=grid,
        in_specs=[pl.BlockSpec((tb, td), lambda i, p, j: (i, j))],
        # Park the output window at (i, 0) during the stats pass (j * p == 0),
        # so each output block is written back exactly once, with final data.
        out_specs=pl.BlockSpec((tb, td), lambda i, p, j: (i, j * p)),
        scratch_shapes=[pltpu.VMEM((tb, 1), jnp.float32),   # running max
                        pltpu.VMEM((tb, 1), jnp.float32)],  # running exp-sum
        compiler_params=pltpu.CompilerParams(
            dimension_semantics=("parallel", "arbitrary", "arbitrary"),
            vmem_limit_bytes=int(vmem_limit)),
        cost_estimate=pl.CostEstimate(
            flops=7 * B * D,
            transcendentals=2 * B * D,
            bytes_accessed=3 * B * D * itemsize),
    )(x)


# ----------------------------------------------------------------------------
# Self-test
# ----------------------------------------------------------------------------
if __name__ == "__main__":
    key = jax.random.PRNGKey(0)
    k1, k2, k3, k4 = jax.random.split(key, 4)

    # Small (batch, features) shapes consistent with the module's contract.
    B, D = 16, 256
    x = jax.random.normal(k1, (B, D), dtype=jnp.float32)
    out = jax.block_until_ready(log_softmax(x))
    ref = jax.nn.log_softmax(x, axis=-1)
    assert out.shape == (B, D)
    assert jnp.allclose(out, ref, atol=1e-5, rtol=1e-5), "mismatch vs reference"

    # Partial last batch tile (B not a multiple of the sublane tile).
    x2 = jax.random.normal(k2, (20, D), dtype=jnp.float32)
    out2 = jax.block_until_ready(log_softmax(x2))
    ref2 = jax.nn.log_softmax(x2, axis=-1)
    assert jnp.allclose(out2, ref2, atol=1e-5, rtol=1e-5), "partial-tile mismatch"

    # bf16 input (dtype-aware sublane tiling, f32 accumulation in-kernel).
    x3 = jax.random.normal(k3, (16, D), dtype=jnp.float32).astype(jnp.bfloat16)
    out3 = jax.block_until_ready(log_softmax(x3))
    ref3 = jax.nn.log_softmax(x3.astype(jnp.float32), axis=-1).astype(jnp.bfloat16)
    assert jnp.allclose(out3.astype(jnp.float32), ref3.astype(jnp.float32),
                        atol=5e-2), "bf16 mismatch"

    # Wide-D two-pass path, forced via a tiny tile budget; D=400 also
    # exercises the masked partial D tile and a partial batch tile.
    x4 = jax.random.normal(k4, (12, 400), dtype=jnp.float32)
    out4 = jax.block_until_ready(log_softmax(x4, max_tile_bytes=8192))
    ref4 = jax.nn.log_softmax(x4, axis=-1)
    assert jnp.allclose(out4, ref4, atol=1e-5, rtol=1e-5), "wide-D path mismatch"

    print("KERNEL_OK")
</pallas_src>

<mosaic_0001>
module attributes {stable_mosaic.version = 11 : i64} {
  func.func @_log_softmax_kernel(%arg0: i32, %arg1: memref<16x256xf32, #tpu.memory_space<vmem>>, %arg2: memref<16x256xf32, #tpu.memory_space<vmem>>) attributes {dimension_semantics = [#tpu.dimension_semantics<parallel>], iteration_bounds = array<i64: 1>, scalar_prefetch = 0 : i64, scratch_operands = 0 : i64, tpu.core_type = #tpu.core_type<tc>, window_params = [{transform_indices = @transform_0, window_bounds = array<i64: 16, 256>}, {transform_indices = @transform_1, window_bounds = array<i64: 16, 256>}]} {
    %c0 = arith.constant 0 : index
    %c0_0 = arith.constant 0 : index
    %0 = vector.load %arg1[%c0, %c0_0] : memref<16x256xf32, #tpu.memory_space<vmem>>, vector<16x256xf32>
    %cst = arith.constant dense<0xFF800000> : vector<16xf32>
    %1 = vector.multi_reduction <maximumf>, %0, %cst [1] : vector<16x256xf32> to vector<16xf32>
    %2 = vector.shape_cast %1 : vector<16xf32> to vector<16x1xf32>
    %3 = vector.broadcast %2 : vector<16x1xf32> to vector<16x256xf32>
    %4 = arith.subf %0, %3 : vector<16x256xf32>
    %5 = math.exp %4 : vector<16x256xf32>
    %cst_1 = arith.constant dense<0.000000e+00> : vector<16xf32>
    %6 = vector.multi_reduction <add>, %5, %cst_1 [1] : vector<16x256xf32> to vector<16xf32>
    %7 = vector.shape_cast %6 : vector<16xf32> to vector<16x1xf32>
    %8 = math.log %7 : vector<16x1xf32>
    %9 = vector.broadcast %8 : vector<16x1xf32> to vector<16x256xf32>
    %10 = arith.subf %4, %9 : vector<16x256xf32>
    %c0_2 = arith.constant 0 : index
    %c0_3 = arith.constant 0 : index
    %11 = vector.load %arg2[%c0_2, %c0_3] : memref<16x256xf32, #tpu.memory_space<vmem>>, vector<16x256xf32>
    tpu.vector_store %arg2[%c0_2, %c0_3], %10 {strides = array<i32>} : memref<16x256xf32, #tpu.memory_space<vmem>>, vector<16x256xf32>,
    return
  }
  func.func @transform_0(%arg0: i32) -> (i32, i32) {
    %c0_i32 = arith.constant 0 : i32
    %c0_i32_0 = arith.constant 0 : i32
    return %arg0, %c0_i32 : i32, i32
  }
  func.func @transform_1(%arg0: i32) -> (i32, i32) {
    %c0_i32 = arith.constant 0 : i32
    %c0_i32_0 = arith.constant 0 : i32
    return %arg0, %c0_i32 : i32, i32
  }
}

</mosaic_0001>

<bundles_post_ra>
// kernel: tpu_custom_call.1
= control target key start
LH: loop header
LB: loop body
LE: loop exit
PB: predicated region body
PF: predicated region fallthrough
CT: control target
= control target key end

     0   :  { %6 = vsyncpa [#allocation3], 0  ;;  %s166_s0 = inlined_call_operand.hbm [shape: f32[16,256], index: 0, kind: input, shape index: {}]   ;;  %s167_s1 = inlined_call_operand.hbm [shape: f32[16,256], index: 1, kind: output, shape index: {}]  }
   0x1   :  { %7 = vsyncpa [#allocation4], 0  ;;  %s140_s6 = smov [#allocation2]  }
   0x2   :  { %s13_s7 = sshll.u32 %s140_s6, 4  ;;  %s14_s7 = int_to_ptr.vmem [resolvable:$true] %s13_s7 }
   0x3   :  { %s104_s8 = scalar_lea.vmem %s14_s7, 512  ;;  %p109_p1 = scmp.lt.s32.totalorder %s14_s7, %s14_s7 }
   0x4   :  { %p105_p0 = scmp.ne.s32.totalorder %s14_s7, %s104_s8  ;;  %p110_p2 = scmp.lt.s32.totalorder %s104_s8, %s104_s8 }
   0x6   :  { %p111_p3 = por %p110_p2, %p109_p1 }
   0x8   :  { %p112_p4 = pnand %p111_p3, %p105_p0 }
   0xa   :  { %115 = shalt.err (!%p112_p4)
}
   0xb   :  { %s141_s9 = smov 256   ;;  %s142_s10 = smov 16  }
   0xc   :  { %19 = dma.hbm_to_vmem [thread:$0]  %s166_s0, 512, %s14_s7, [#allocation3], %s141_s9, %s141_s9, %s142_s10  }
   0xd   :  { %136 = dma.done.wait [#allocation3], 512  }
   0xe   :  { %137 = vsyncadd [#allocation3], 4294966784  ;;  %v23_v0 = vld [vmem:[#allocation2] sm:$0xff]  ;;  %v24_v1 = vld [vmem:[#allocation2 + $0x8] sm:$0xff]  ;;  %s143_s0 = smov [#allocation5]  }
   0xf   :  { %v25_v2 = vld [vmem:[#allocation2 + $0x10] sm:$0xff]  ;;  %v27_v3 = vmax.f32 %v23_v0, %v24_v1  ;;  %v26_v4 = vld [vmem:[#allocation2 + $0x18] sm:$0xff]  ;;  %s68_s13 = sshll.u32 %s143_s0, 4  ;;  %s69_s13 = int_to_ptr.vmem [resolvable:$true] %s68_s13 }
  0x10   :  { %v30_v5 = vmax.f32 %v25_v2, %v26_v4  ;;  %s116_s14 = scalar_lea.vmem %s69_s13, 512  ;;  %p121_p6 = scmp.lt.s32.totalorder %s69_s13, %s69_s13 }
  0x11   :  { %28 = vmax.xlane.f32.xlu0 %v27_v3  ;;  %p117_p5 = scmp.ne.s32.totalorder %s69_s13, %s116_s14  ;;  %p122_p7 = scmp.lt.s32.totalorder %s116_s14, %s116_s14 }
  0x13   :  { %p123_p8 = por %p122_p7, %p121_p6 }
  0x15   :  { %31 = vmax.xlane.f32.xlu0 %v30_v5  ;;  %p124_p9 = pnand %p123_p8, %p117_p5 }
  0x9a   :  { %v29_v6 = vpop.xlane.xlu0 %28 }
  0x9b   :  { %v33_v7 = vsub.f32 %v23_v0, %v29_v6  ;;  %v34_v8 = vsub.f32 %v24_v1, %v29_v6 }
  0x9d   :  { %v37_v9 = vmul.f32 1.442695, %v33_v7  ;;  %v39_v10 = vmul.f32 1.442695, %v34_v8 }
  0x9e   :  { %v32_v11 = vpop.xlane.xlu0 %31 }
  0x9f   :  { %84 = vpow2.f32 %v37_v9  ;;  %v35_v12 = vsub.f32 %v25_v2, %v32_v11  ;;  %v36_v13 = vsub.f32 %v26_v4, %v32_v11 }
  0xa0   :  { %86 = vpow2.f32 %v39_v10 }
  0xa1   :  { %v41_v14 = vmul.f32 1.442695, %v35_v12  ;;  %v43_v15 = vmul.f32 1.442695, %v36_v13 }
  0xa3   :  { %88 = vpow2.f32 %v41_v14 }
  0xa4   :  { %90 = vpow2.f32 %v43_v15 }
  0xac   :  { %v85_v16 = vpop.eup %84 }
  0xad   :  { %v87_v17 = vpop.eup %86 }
  0xae   :  { %v45_v18 = vadd.f32 %v87_v17, %v85_v16 }
  0xb0   :  { %v89_v19 = vpop.eup %88  ;;  %46 = vadd.xlane.f32.xlu1 %v45_v18 }
  0xb1   :  { %v91_v20 = vpop.eup %90 }
  0xb2   :  { %v48_v21 = vadd.f32 %v91_v20, %v89_v19 }
  0xb4   :  { %49 = vadd.xlane.f32.xlu1 %v48_v21 }
 0x139   :  { %v47_v22 = vpop.xlane.xlu1 %46 }
 0x13a   :  { %92 = vlog2.f32 %v47_v22 }
 0x13d   :  { %v50_v23 = vpop.xlane.xlu1 %49 }
 0x13e   :  { %94 = vlog2.f32 %v50_v23 }
 0x147   :  { %v93_v24 = vpop.eup %92 }
 0x148   :  { %v52_v25 = vmul.f32 0.6931472, %v93_v24 }
 0x14a   :  { %v55_v26 = vsub.f32 %v33_v7, %v52_v25  ;;  %v56_v27 = vsub.f32 %v34_v8, %v52_v25 }
 0x14b   :  { %v95_v28 = vpop.eup %94 }
 0x14c   :  { %59 = vst [vmem:[#allocation5] sm:$0xff] %v55_v26  ;;  %60 = vst [vmem:[#allocation5 + $0x8] sm:$0xff] %v56_v27  ;;  %v54_v29 = vmul.f32 0.6931472, %v95_v28 }
 0x14e   :  { %v57_v30 = vsub.f32 %v35_v12, %v54_v29  ;;  %v58_v31 = vsub.f32 %v36_v13, %v54_v29 }
 0x150   :  { %61 = vst [vmem:[#allocation5 + $0x10] sm:$0xff] %v57_v30  ;;  %62 = vst [vmem:[#allocation5 + $0x18] sm:$0xff] %v58_v31 }
 0x151   :  { %127 = shalt.err (!%p124_p9)
}
 0x152   :  { %74 = dma.vmem_to_hbm [thread:$0]  %s69_s13, 512, %s167_s1, [#allocation4], %s141_s9, %s141_s9, %s142_s10  }
 0x153   :  { %138 = dma.done.wait [#allocation4], 512  }
 0x154   :  { %139 = vsyncadd [#allocation4], 4294966784 }
 0x155   :  { %78 = vsyncpa [#allocation3], 1 }
 0x156   :  { %79 = vsyncpa [#allocation4], 1 }

</bundles_post_ra>
